<compile_context>
chip_gen: v6e
topology: v6e:2x2x1
jax: 0.10.0
libtpu: 0.0.40
codegen_flags: <defaults>
</compile_context>

<pallas_src>
import jax
import jax.numpy as jnp
from jax.experimental import pallas as pl
from jax.experimental.pallas import tpu as pltpu

# Hyper-parameters implied by the module's __init__.
ENCODING_DIM = 8
PEPTIDE_LEN = 9
HLA_LEN = 16
D_PEP = ENCODING_DIM * PEPTIDE_LEN              # 72
D_HLA = ENCODING_DIM * HLA_LEN                  # 128
D_IN = D_PEP + D_HLA                            # 200
H1 = D_IN // 2                                  # 100  (L_in out)
H2 = H1 // 2                                    # 50   (L_2 out)
BN_EPS = 1e-5

# Lane-padded feature widths used inside the kernel (zero padding is inert).
H1P = 128
H2P = 128


def _round_up(x, m):
    return ((x + m - 1) // m) * m


def _pad_to(a, shape):
    pads = [(0, t - s) for s, t in zip(a.shape, shape)]
    return jnp.pad(a, pads)


def dense3_kernel(pep_ref, hla_ref,
                  w1a_ref, w1b_ref, scale1_ref, shift1_ref,
                  w2_ref, b2_ref, scale2_ref, shift2_ref,
                  w3a_ref, w3b_ref,
                  out_ref):
    # In-kernel bf16 cast (VPU) -> MXU with f32 accumulation.
    pep = pep_ref[...].astype(jnp.bfloat16)
    hla = hla_ref[...].astype(jnp.bfloat16)

    # L_in over the (virtual) concat: pep @ W1a + hla @ W1b
    acc1 = jnp.dot(pep, w1a_ref[...], preferred_element_type=jnp.float32)
    acc1 = acc1 + jnp.dot(hla, w1b_ref[...], preferred_element_type=jnp.float32)
    # BN1 (L_in bias folded into shift) -> Dropout(eval)=id -> ReLU   [TB, H1P] f32
    h1 = jnp.maximum(acc1 * scale1_ref[...] + shift1_ref[...], 0.0)

    # L_2 -> ReLU -> BN2 -> Dropout(eval)=id                          [TB, H2P] f32
    t = jnp.dot(h1.astype(jnp.bfloat16), w2_ref[...],
                preferred_element_type=jnp.float32)
    h2 = jnp.maximum(t + b2_ref[...], 0.0) * scale2_ref[...] + shift2_ref[...]

    # L_3 on cat([h2, h1]) with out_features=1: one fused VPU multiply-add and a
    # single lane reduction (bias + sigmoid applied outside the kernel).
    out_ref[...] = jnp.sum(h2 * w3a_ref[...] + h1 * w3b_ref[...],
                           axis=-1, keepdims=True)


def init_params(key):
    ks = jax.random.split(key, 10)
    f32 = jnp.float32
    return dict(
        # Linear weights stored as (in, out) — transpose of PyTorch's (out, in).
        w1=jax.random.normal(ks[0], (D_IN, H1), f32) * 0.05,
        b1=jax.random.normal(ks[1], (H1,), f32) * 0.05,
        w2=jax.random.normal(ks[2], (H1, H2), f32) * 0.05,
        b2=jax.random.normal(ks[3], (H2,), f32) * 0.05,
        w3=jax.random.normal(ks[4], (H2 + H1, 1), f32) * 0.05,
        b3=jax.random.normal(ks[5], (1,), f32) * 0.05,
        # BatchNorm1d parameters + running stats (eval mode).
        bn1_gamma=1.0 + 0.1 * jax.random.normal(ks[6], (H1,), f32),
        bn1_beta=0.1 * jax.random.normal(ks[7], (H1,), f32),
        bn1_mean=0.1 * jax.random.normal(ks[8], (H1,), f32),
        bn1_var=jnp.abs(1.0 + 0.1 * jax.random.normal(ks[9], (H1,), f32)),
        bn2_gamma=jnp.ones((H2,), f32),
        bn2_beta=jnp.zeros((H2,), f32),
        bn2_mean=jnp.zeros((H2,), f32),
        bn2_var=jnp.ones((H2,), f32),
    )


def dense_layer_3_highest(peptide, hla, params, *, block_b=4096):
    """Eval-mode forward. peptide: [B, 9, 8], hla: [B, 16, 8] -> [B, 1]."""
    B = peptide.shape[0]
    pep = peptide.reshape(B, D_PEP)          # free view
    hla2 = hla.reshape(B, D_HLA)             # free view

    # ---- batch tiling: pad only to a multiple of 8, ragged final block ----
    B8 = _round_up(B, 8)
    if B8 != B:
        pep = jnp.pad(pep, ((0, B8 - B), (0, 0)))
        hla2 = jnp.pad(hla2, ((0, B8 - B), (0, 0)))
    # Tile: <= block_b, >= 1024 (but never larger than the batch), and sized so
    # large batches produce >= ~8 grid steps (megacore / v7x second TC).
    TB = min(block_b, max(1024, _round_up(pl.cdiv(B8, 8), 8)), B8)
    grid = (pl.cdiv(B8, TB),)

    # ---- fold eval-mode BatchNorm into per-feature scale/shift ----
    bn1s = params["bn1_gamma"] / jnp.sqrt(params["bn1_var"] + BN_EPS)
    bn1b = params["bn1_beta"] - params["bn1_mean"] * bn1s
    bn2s = params["bn2_gamma"] / jnp.sqrt(params["bn2_var"] + BN_EPS)
    bn2b = params["bn2_beta"] - params["bn2_mean"] * bn2s

    # L_in: split along the (virtual) concat axis, pad out-features to 128 lanes.
    w1 = params["w1"]
    w1a = _pad_to(w1[:D_PEP], (D_PEP, H1P)).astype(jnp.bfloat16)
    w1b = _pad_to(w1[D_PEP:], (D_HLA, H1P)).astype(jnp.bfloat16)
    scale1 = _pad_to(bn1s.reshape(1, H1), (1, H1P))                       # f32
    shift1 = _pad_to((params["b1"] * bn1s + bn1b).reshape(1, H1), (1, H1P))

    # L_2 (+ BN2).  Zero-pad both dims to 128.
    w2 = _pad_to(params["w2"], (H1P, H2P)).astype(jnp.bfloat16)
    b2 = _pad_to(params["b2"].reshape(1, H2), (1, H2P))
    scale2 = _pad_to(bn2s.reshape(1, H2), (1, H2P))
    shift2 = _pad_to(bn2b.reshape(1, H2), (1, H2P))

    # L_3 on cat([h2, h1]): split weight column into two broadcastable rows.
    w3 = params["w3"]
    w3a = _pad_to(w3[:H2, 0].reshape(1, H2), (1, H2P))    # multiplies h2
    w3b = _pad_to(w3[H2:, 0].reshape(1, H1), (1, H1P))    # multiplies h1

    const2d = lambda i: (0, 0)
    in_specs = [
        pl.BlockSpec((TB, D_PEP), lambda i: (i, 0)),
        pl.BlockSpec((TB, D_HLA), lambda i: (i, 0)),
        pl.BlockSpec(w1a.shape, const2d),
        pl.BlockSpec(w1b.shape, const2d),
        pl.BlockSpec(scale1.shape, const2d),
        pl.BlockSpec(shift1.shape, const2d),
        pl.BlockSpec(w2.shape, const2d),
        pl.BlockSpec(b2.shape, const2d),
        pl.BlockSpec(scale2.shape, const2d),
        pl.BlockSpec(shift2.shape, const2d),
        pl.BlockSpec(w3a.shape, const2d),
        pl.BlockSpec(w3b.shape, const2d),
    ]
    out_spec = pl.BlockSpec((TB, 1), lambda i: (i, 0))

    mm_flops = 2 * B8 * (D_PEP * H1P + D_HLA * H1P + H1P * H2P)
    vpu_flops = B8 * (8 * H1P + 8 * H2P)
    weight_bytes = 2 * (D_PEP * H1P + D_HLA * H1P + H1P * H2P) + 4 * 7 * 128
    cost = pl.CostEstimate(
        flops=mm_flops + vpu_flops,
        transcendentals=0,                                  # sigmoid is outside
        bytes_accessed=B8 * ((D_PEP + D_HLA) * 4 + 4) + weight_bytes,
    )

    logits = pl.pallas_call(
        dense3_kernel,
        out_shape=jax.ShapeDtypeStruct((B8, 1), jnp.float32),
        grid=grid,
        in_specs=in_specs,
        out_specs=out_spec,
        compiler_params=pltpu.CompilerParams(
            dimension_semantics=("parallel",),              # shard batch across TCs
            vmem_limit_bytes=32 * 1024 * 1024),
        cost_estimate=cost,
    )(pep, hla2,
      w1a, w1b, scale1, shift1,
      w2, b2, scale2, shift2,
      w3a, w3b)

    # L_3 bias + sigmoid on the tiny [B, 1] result (lane-sparse EUP work stays
    # out of the hot kernel).
    return jax.nn.sigmoid(logits[:B] + params["b3"].reshape(1, 1))


def reference_forward(peptide, hla, params):
    B = peptide.shape[0]
    x = jnp.concatenate([peptide.reshape(B, -1), hla.reshape(B, -1)], axis=1)
    h1 = x @ params["w1"] + params["b1"]
    h1 = (h1 - params["bn1_mean"]) / jnp.sqrt(params["bn1_var"] + BN_EPS) \
         * params["bn1_gamma"] + params["bn1_beta"]
    h1 = jnp.maximum(h1, 0.0)
    h2 = jnp.maximum(h1 @ params["w2"] + params["b2"], 0.0)
    h2 = (h2 - params["bn2_mean"]) / jnp.sqrt(params["bn2_var"] + BN_EPS) \
         * params["bn2_gamma"] + params["bn2_beta"]
    logit = jnp.concatenate([h2, h1], axis=1) @ params["w3"] + params["b3"]
    return jax.nn.sigmoid(logit)


if __name__ == "__main__":
    key = jax.random.PRNGKey(0)
    k_pep, k_hla, k_par = jax.random.split(key, 3)

    B = 8
    peptide = jax.random.normal(k_pep, (B, PEPTIDE_LEN, ENCODING_DIM), jnp.float32)
    hla = jax.random.normal(k_hla, (B, HLA_LEN, ENCODING_DIM), jnp.float32)
    params = init_params(k_par)

    out = dense_layer_3_highest(peptide, hla, params)
    out = jax.block_until_ready(out)

    ref = reference_forward(peptide, hla, params)
    assert out.shape == (B, 1), out.shape
    # bf16 MXU operands with f32 accumulation -> loosened tolerance vs f32 reference.
    assert jnp.allclose(out, ref, atol=2e-2, rtol=2e-2), (out, ref)

    print("KERNEL_OK")
</pallas_src>

<mosaic_0001>
module attributes {stable_mosaic.version = 11 : i64} {
  func.func @dense3_kernel(%arg0: i32, %arg1: memref<8x72xf32, #tpu.memory_space<vmem>>, %arg2: memref<8x128xf32, #tpu.memory_space<vmem>>, %arg3: memref<72x128xbf16, #tpu.memory_space<vmem>>, %arg4: memref<128x128xbf16, #tpu.memory_space<vmem>>, %arg5: memref<1x128xf32, #tpu.memory_space<vmem>>, %arg6: memref<1x128xf32, #tpu.memory_space<vmem>>, %arg7: memref<128x128xbf16, #tpu.memory_space<vmem>>, %arg8: memref<1x128xf32, #tpu.memory_space<vmem>>, %arg9: memref<1x128xf32, #tpu.memory_space<vmem>>, %arg10: memref<1x128xf32, #tpu.memory_space<vmem>>, %arg11: memref<1x128xf32, #tpu.memory_space<vmem>>, %arg12: memref<1x128xf32, #tpu.memory_space<vmem>>, %arg13: memref<8x1xf32, #tpu.memory_space<vmem>>) attributes {dimension_semantics = [#tpu.dimension_semantics<parallel>], iteration_bounds = array<i64: 1>, scalar_prefetch = 0 : i64, scratch_operands = 0 : i64, tpu.core_type = #tpu.core_type<tc>, window_params = [{transform_indices = @transform_0, window_bounds = array<i64: 8, 72>}, {transform_indices = @transform_1, window_bounds = array<i64: 8, 128>}, {pipeline_mode = #tpu.pipeline_mode<synchronous>, transform_indices = @transform_2, window_bounds = array<i64: 72, 128>}, {pipeline_mode = #tpu.pipeline_mode<synchronous>, transform_indices = @transform_3, window_bounds = array<i64: 128, 128>}, {pipeline_mode = #tpu.pipeline_mode<synchronous>, transform_indices = @transform_4, window_bounds = array<i64: 1, 128>}, {pipeline_mode = #tpu.pipeline_mode<synchronous>, transform_indices = @transform_5, window_bounds = array<i64: 1, 128>}, {pipeline_mode = #tpu.pipeline_mode<synchronous>, transform_indices = @transform_6, window_bounds = array<i64: 128, 128>}, {pipeline_mode = #tpu.pipeline_mode<synchronous>, transform_indices = @transform_7, window_bounds = array<i64: 1, 128>}, {pipeline_mode = #tpu.pipeline_mode<synchronous>, transform_indices = @transform_8, window_bounds = array<i64: 1, 128>}, {pipeline_mode = #tpu.pipeline_mode<synchronous>, transform_indices = @transform_9, window_bounds = array<i64: 1, 128>}, {pipeline_mode = #tpu.pipeline_mode<synchronous>, transform_indices = @transform_10, window_bounds = array<i64: 1, 128>}, {pipeline_mode = #tpu.pipeline_mode<synchronous>, transform_indices = @transform_11, window_bounds = array<i64: 1, 128>}, {transform_indices = @transform_12, window_bounds = array<i64: 8, 1>}]} {
    %c0 = arith.constant 0 : index
    %c0_0 = arith.constant 0 : index
    %0 = vector.load %arg1[%c0, %c0_0] : memref<8x72xf32, #tpu.memory_space<vmem>>, vector<8x72xf32>
    %1 = arith.truncf %0 : vector<8x72xf32> to vector<8x72xbf16>
    %c0_1 = arith.constant 0 : index
    %c0_2 = arith.constant 0 : index
    %2 = vector.load %arg2[%c0_1, %c0_2] : memref<8x128xf32, #tpu.memory_space<vmem>>, vector<8x128xf32>
    %3 = arith.truncf %2 : vector<8x128xf32> to vector<8x128xbf16>
    %c0_3 = arith.constant 0 : index
    %c0_4 = arith.constant 0 : index
    %4 = vector.load %arg3[%c0_3, %c0_4] : memref<72x128xbf16, #tpu.memory_space<vmem>>, vector<72x128xbf16>
    %cst = arith.constant dense<0.000000e+00> : vector<8x128xf32>
    %5 = tpu.matmul %1, %4, %cst {dimension_numbers = #tpu.dot_dimension_numbers<[1], [0], [0], [1], [0, 0, 1, 1], [], []>} : vector<8x72xbf16>, vector<72x128xbf16>, vector<8x128xf32> -> vector<8x128xf32>
    %c0_5 = arith.constant 0 : index
    %c0_6 = arith.constant 0 : index
    %6 = vector.load %arg4[%c0_5, %c0_6] : memref<128x128xbf16, #tpu.memory_space<vmem>>, vector<128x128xbf16>
    %cst_7 = arith.constant dense<0.000000e+00> : vector<8x128xf32>
    %7 = tpu.matmul %3, %6, %cst_7 {dimension_numbers = #tpu.dot_dimension_numbers<[1], [0], [0], [1], [0, 0, 1, 1], [], []>} : vector<8x128xbf16>, vector<128x128xbf16>, vector<8x128xf32> -> vector<8x128xf32>
    %8 = arith.addf %5, %7 : vector<8x128xf32>
    %c0_8 = arith.constant 0 : index
    %c0_9 = arith.constant 0 : index
    %9 = vector.load %arg5[%c0_8, %c0_9] : memref<1x128xf32, #tpu.memory_space<vmem>>, vector<1x128xf32>
    %10 = vector.broadcast %9 : vector<1x128xf32> to vector<8x128xf32>
    %11 = arith.mulf %8, %10 : vector<8x128xf32>
    %c0_10 = arith.constant 0 : index
    %c0_11 = arith.constant 0 : index
    %12 = vector.load %arg6[%c0_10, %c0_11] : memref<1x128xf32, #tpu.memory_space<vmem>>, vector<1x128xf32>
    %13 = vector.broadcast %12 : vector<1x128xf32> to vector<8x128xf32>
    %14 = arith.addf %11, %13 : vector<8x128xf32>
    %cst_12 = arith.constant 0.000000e+00 : f32
    %15 = vector.broadcast %cst_12 : f32 to vector<8x128xf32>
    %16 = arith.maximumf %14, %15 : vector<8x128xf32>
    %17 = arith.truncf %16 : vector<8x128xf32> to vector<8x128xbf16>
    %c0_13 = arith.constant 0 : index
    %c0_14 = arith.constant 0 : index
    %18 = vector.load %arg7[%c0_13, %c0_14] : memref<128x128xbf16, #tpu.memory_space<vmem>>, vector<128x128xbf16>
    %cst_15 = arith.constant dense<0.000000e+00> : vector<8x128xf32>
    %19 = tpu.matmul %17, %18, %cst_15 {dimension_numbers = #tpu.dot_dimension_numbers<[1], [0], [0], [1], [0, 0, 1, 1], [], []>} : vector<8x128xbf16>, vector<128x128xbf16>, vector<8x128xf32> -> vector<8x128xf32>
    %c0_16 = arith.constant 0 : index
    %c0_17 = arith.constant 0 : index
    %20 = vector.load %arg8[%c0_16, %c0_17] : memref<1x128xf32, #tpu.memory_space<vmem>>, vector<1x128xf32>
    %21 = vector.broadcast %20 : vector<1x128xf32> to vector<8x128xf32>
    %22 = arith.addf %19, %21 : vector<8x128xf32>
    %cst_18 = arith.constant 0.000000e+00 : f32
    %23 = vector.broadcast %cst_18 : f32 to vector<8x128xf32>
    %24 = arith.maximumf %22, %23 : vector<8x128xf32>
    %c0_19 = arith.constant 0 : index
    %c0_20 = arith.constant 0 : index
    %25 = vector.load %arg9[%c0_19, %c0_20] : memref<1x128xf32, #tpu.memory_space<vmem>>, vector<1x128xf32>
    %26 = vector.broadcast %25 : vector<1x128xf32> to vector<8x128xf32>
    %27 = arith.mulf %24, %26 : vector<8x128xf32>
    %c0_21 = arith.constant 0 : index
    %c0_22 = arith.constant 0 : index
    %28 = vector.load %arg10[%c0_21, %c0_22] : memref<1x128xf32, #tpu.memory_space<vmem>>, vector<1x128xf32>
    %29 = vector.broadcast %28 : vector<1x128xf32> to vector<8x128xf32>
    %30 = arith.addf %27, %29 : vector<8x128xf32>
    %c0_23 = arith.constant 0 : index
    %c0_24 = arith.constant 0 : index
    %31 = vector.load %arg11[%c0_23, %c0_24] : memref<1x128xf32, #tpu.memory_space<vmem>>, vector<1x128xf32>
    %32 = vector.broadcast %31 : vector<1x128xf32> to vector<8x128xf32>
    %33 = arith.mulf %30, %32 : vector<8x128xf32>
    %c0_25 = arith.constant 0 : index
    %c0_26 = arith.constant 0 : index
    %34 = vector.load %arg12[%c0_25, %c0_26] : memref<1x128xf32, #tpu.memory_space<vmem>>, vector<1x128xf32>
    %35 = vector.broadcast %34 : vector<1x128xf32> to vector<8x128xf32>
    %36 = arith.mulf %16, %35 : vector<8x128xf32>
    %37 = arith.addf %33, %36 : vector<8x128xf32>
    %cst_27 = arith.constant dense<0.000000e+00> : vector<8xf32>
    %38 = vector.multi_reduction <add>, %37, %cst_27 [1] : vector<8x128xf32> to vector<8xf32>
    %39 = vector.shape_cast %38 : vector<8xf32> to vector<8x1xf32>
    %c0_28 = arith.constant 0 : index
    %c0_29 = arith.constant 0 : index
    %40 = vector.load %arg13[%c0_28, %c0_29] : memref<8x1xf32, #tpu.memory_space<vmem>>, vector<8x1xf32>
    tpu.vector_store %arg13[%c0_28, %c0_29], %39 {strides = array<i32>} : memref<8x1xf32, #tpu.memory_space<vmem>>, vector<8x1xf32>,
    return
  }
  func.func @transform_0(%arg0: i32) -> (i32, i32) {
    %c0_i32 = arith.constant 0 : i32
    %c0_i32_0 = arith.constant 0 : i32
    return %arg0, %c0_i32 : i32, i32
  }
  func.func @transform_1(%arg0: i32) -> (i32, i32) {
    %c0_i32 = arith.constant 0 : i32
    %c0_i32_0 = arith.constant 0 : i32
    return %arg0, %c0_i32 : i32, i32
  }
  func.func @transform_2(%arg0: i32) -> (i32, i32) {
    %c0_i32 = arith.constant 0 : i32
    %c0_i32_0 = arith.constant 0 : i32
    %c0_i32_1 = arith.constant 0 : i32
    return %c0_i32, %c0_i32_0 : i32, i32
  }
  func.func @transform_3(%arg0: i32) -> (i32, i32) {
    %c0_i32 = arith.constant 0 : i32
    %c0_i32_0 = arith.constant 0 : i32
    %c0_i32_1 = arith.constant 0 : i32
    return %c0_i32, %c0_i32_0 : i32, i32
  }
  func.func @transform_4(%arg0: i32) -> (i32, i32) {
    %c0_i32 = arith.constant 0 : i32
    %c0_i32_0 = arith.constant 0 : i32
    %c0_i32_1 = arith.constant 0 : i32
    return %c0_i32, %c0_i32_0 : i32, i32
  }
  func.func @transform_5(%arg0: i32) -> (i32, i32) {
    %c0_i32 = arith.constant 0 : i32
    %c0_i32_0 = arith.constant 0 : i32
    %c0_i32_1 = arith.constant 0 : i32
    return %c0_i32, %c0_i32_0 : i32, i32
  }
  func.func @transform_6(%arg0: i32) -> (i32, i32) {
    %c0_i32 = arith.constant 0 : i32
    %c0_i32_0 = arith.constant 0 : i32
    %c0_i32_1 = arith.constant 0 : i32
    return %c0_i32, %c0_i32_0 : i32, i32
  }
  func.func @transform_7(%arg0: i32) -> (i32, i32) {
    %c0_i32 = arith.constant 0 : i32
    %c0_i32_0 = arith.constant 0 : i32
    %c0_i32_1 = arith.constant 0 : i32
    return %c0_i32, %c0_i32_0 : i32, i32
  }
  func.func @transform_8(%arg0: i32) -> (i32, i32) {
    %c0_i32 = arith.constant 0 : i32
    %c0_i32_0 = arith.constant 0 : i32
    %c0_i32_1 = arith.constant 0 : i32
    return %c0_i32, %c0_i32_0 : i32, i32
  }
  func.func @transform_9(%arg0: i32) -> (i32, i32) {
    %c0_i32 = arith.constant 0 : i32
    %c0_i32_0 = arith.constant 0 : i32
    %c0_i32_1 = arith.constant 0 : i32
    return %c0_i32, %c0_i32_0 : i32, i32
  }
  func.func @transform_10(%arg0: i32) -> (i32, i32) {
    %c0_i32 = arith.constant 0 : i32
    %c0_i32_0 = arith.constant 0 : i32
    %c0_i32_1 = arith.constant 0 : i32
    return %c0_i32, %c0_i32_0 : i32, i32
  }
  func.func @transform_11(%arg0: i32) -> (i32, i32) {
    %c0_i32 = arith.constant 0 : i32
    %c0_i32_0 = arith.constant 0 : i32
    %c0_i32_1 = arith.constant 0 : i32
    return %c0_i32, %c0_i32_0 : i32, i32
  }
  func.func @transform_12(%arg0: i32) -> (i32, i32) {
    %c0_i32 = arith.constant 0 : i32
    %c0_i32_0 = arith.constant 0 : i32
    return %arg0, %c0_i32 : i32, i32
  }
}

</mosaic_0001>

<bundles_post_ra>
// kernel: tpu_custom_call.1
= control target key start
LH: loop header
LB: loop body
LE: loop exit
PB: predicated region body
PF: predicated region fallthrough
CT: control target
= control target key end

     0   :  { %17 = vsyncpa [#allocation3], 0  ;;  %s864_s0 = inlined_call_operand.hbm [shape: f32[8,72], index: 0, kind: input, shape index: {}]   ;;  %s865_s1 = inlined_call_operand.hbm [shape: f32[8,128], index: 1, kind: input, shape index: {}]   ;;  %s866_s2 = inlined_call_operand.hbm [shape: bf16[72,128], index: 2, kind: input, shape index: {}]   ;;  %s867_s3 = inlined_call_operand.hbm [shape: bf16[128,128], index: 3, kind: input, shape index: {}]   ;;  %s868_s4 = inlined_call_operand.vmem [shape: f32[1,128], index: 4, kind: input, shape index: {}]   ;;  %s869_s5 = inlined_call_operand.vmem [shape: f32[1,128], index: 5, kind: input, shape index: {}]   ;;  %s870_s6 = inlined_call_operand.hbm [shape: bf16[128,128], index: 6, kind: input, shape index: {}]   ;;  %s871_s7 = inlined_call_operand.vmem [shape: f32[1,128], index: 7, kind: input, shape index: {}]   ;;  %s872_s8 = inlined_call_operand.vmem [shape: f32[1,128], index: 8, kind: input, shape index: {}]   ;;  %s873_s9 = inlined_call_operand.vmem [shape: f32[1,128], index: 9, kind: input, shape index: {}]   ;;  %s874_s10 = inlined_call_operand.vmem [shape: f32[1,128], index: 10, kind: input, shape index: {}]   ;;  %s875_s11 = inlined_call_operand.vmem [shape: f32[1,128], index: 11, kind: input, shape index: {}]   ;;  %s876_s12 = inlined_call_operand.vmem [shape: f32[8,1], index: 12, kind: output, shape index: {}]  }
   0x1   :  { %18 = vsyncpa [#allocation5], 0 }
   0x2   :  { %19 = vsyncpa [#allocation8], 0  ;;  %s715_s21 = smov [#allocation4]  }
   0x3   :  { %s36_s22 = sshll.u32 %s715_s21, 4  ;;  %s37_s22 = int_to_ptr.vmem [resolvable:$true] %s36_s22 }
   0x4   :  { %s617_s23 = scalar_lea.vmem %s37_s22, 128  ;;  %p622_p1 = scmp.lt.s32.totalorder %s37_s22, %s37_s22 }
   0x5   :  { %p618_p0 = scmp.ne.s32.totalorder %s37_s22, %s617_s23  ;;  %p623_p2 = scmp.lt.s32.totalorder %s617_s23, %s617_s23 }
   0x7   :  { %p624_p3 = por %p623_p2, %p622_p1 }
   0x9   :  { %p625_p4 = pnand %p624_p3, %p618_p0 }
   0xb   :  { %628 = shalt.err (!%p625_p4)
}
   0xc   :  { %39 = dma.hbm_to_vmem [thread:$0]  %s865_s1, 128, %s37_s22, [#allocation5]  }
   0xd   :  { %s716_s26 = smov [#allocation7]   ;;  %s717_s28 = smov [#allocation2]  }
   0xe   :  { %s57_s27 = sshll.u32 %s716_s26, 4  ;;  %s26_s29 = sshll.u32 %s717_s28, 4  ;;  %s58_s27 = int_to_ptr.vmem [resolvable:$true] %s57_s27  ;;  %s27_s29 = int_to_ptr.vmem [resolvable:$true] %s26_s29 }
   0xf   :  { %s637_s30 = scalar_lea.vmem %s58_s27, 1024  ;;  %p642_p6 = scmp.lt.s32.totalorder %s58_s27, %s58_s27 }
  0x10   :  { %p638_p5 = scmp.ne.s32.totalorder %s58_s27, %s637_s30  ;;  %p643_p7 = scmp.lt.s32.totalorder %s637_s30, %s637_s30 }
  0x12   :  { %p644_p8 = por %p643_p7, %p642_p6 }
  0x14   :  { %p645_p9 = pnand %p644_p8, %p638_p5 }
  0x16   :  { %648 = shalt.err (!%p645_p9)
}
  0x17   :  { %s718_s13 = smov 64   ;;  %s719_s14 = smov 4  }
  0x18   :  { %63 = dma.hbm_to_vmem [thread:$0]  %s867_s3, 1024, %s58_s27, [#allocation8], %s718_s13, %s718_s13, %s719_s14  }
  0x19   :  { %s657_s1 = scalar_lea.vmem %s27_s29, 128  ;;  %p662_p11 = scmp.lt.s32.totalorder %s27_s29, %s27_s29 }
  0x1a   :  { %p658_p10 = scmp.ne.s32.totalorder %s27_s29, %s657_s1  ;;  %p663_p12 = scmp.lt.s32.totalorder %s657_s1, %s657_s1 }
  0x1c   :  { %p664_p13 = por %p663_p12, %p662_p11 }
  0x1e   :  { %p665_p0 = pnand %p664_p13, %p658_p10 }
  0x20   :  { %668 = shalt.err (!%p665_p0)
}
  0x21   :  { %29 = dma.hbm_to_vmem [thread:$0]  %s864_s0, 128, %s27_s29, [#allocation3]  }
  0x22   :  { %s720_s19 = smov [#allocation6]   ;;  %s721_s21 = smov [#allocation9]  }
  0x23   :  { %s45_s20 = sshll.u32 %s720_s19, 4  ;;  %s73_s22 = sshll.u32 %s721_s21, 4  ;;  %s46_s20 = int_to_ptr.vmem [resolvable:$true] %s45_s20  ;;  %s74_s22 = int_to_ptr.vmem [resolvable:$true] %s73_s22 }
  0x24   :  { %s677_s23 = scalar_lea.vmem %s46_s20, 576  ;;  %p682_p2 = scmp.lt.s32.totalorder %s46_s20, %s46_s20 }
  0x25   :  { %p678_p1 = scmp.ne.s32.totalorder %s46_s20, %s677_s23  ;;  %p683_p3 = scmp.lt.s32.totalorder %s677_s23, %s677_s23 }
  0x27   :  { %p684_p4 = por %p683_p3, %p682_p2 }
  0x29   :  { %p685_p5 = pnand %p684_p4, %p678_p1 }
  0x2b   :  { %688 = shalt.err (!%p685_p5)
}
  0x2c   :  { %51 = dma.hbm_to_vmem [thread:$0]  %s866_s2, 576, %s46_s20, [#allocation5], %s718_s13, %s718_s13, %s719_s14  }
  0x2d   :  { %s697_s0 = scalar_lea.vmem %s74_s22, 1024  ;;  %p702_p7 = scmp.lt.s32.totalorder %s74_s22, %s74_s22 }
  0x2e   :  { %p698_p6 = scmp.ne.s32.totalorder %s74_s22, %s697_s0  ;;  %p703_p8 = scmp.lt.s32.totalorder %s697_s0, %s697_s0 }
  0x30   :  { %p704_p9 = por %p703_p8, %p702_p7 }
  0x32   :  { %p705_p10 = pnand %p704_p9, %p698_p6 }
  0x34   :  { %708 = shalt.err (!%p705_p10)
}
  0x35   :  { %79 = dma.hbm_to_vmem [thread:$0]  %s870_s6, 1024, %s74_s22, [#allocation8], %s718_s13, %s718_s13, %s719_s14  }
  0x36   :  { %709 = dma.done.wait [#allocation3], 128  }
  0x37   :  { %710 = vsyncadd [#allocation3], 4294967168 }
  0x38   :  { %711 = dma.done.wait [#allocation5], 704  }
  0x39   :  { %712 = vsyncadd [#allocation5], 4294966592 }
  0x3a   :  { %713 = dma.done.wait [#allocation8], 2048  }
  0x3b   :  { %714 = vsyncadd [#allocation8], 4294965248  ;;  %v722_v0 = vmov 0.0   ;;  %vm723_vm0 = vmmov 0   ;;  %v588_v1 = vld [vmem:[#allocation7 + $0x38] sm:$0xff]   ;;  %v589_v2 = vld [vmem:[#allocation7 + $0x30] sm:$0xff]  }
  0x3c   :  { %525 = vmatprep.subr.bf16.mxu0 %v722_v0  ;;  %545 = vmatprep.subr.bf16.mxu1 %v722_v0  ;;  %vm254_vm1 = vcmask 1043456   ;;  %v590_v3 = vld [vmem:[#allocation6 + $0x20] ss:$0 sps:$4 sm:$0xff]   ;;  %v592_v5 = vld [vmem:[#allocation6 + $0x18] sm:$0xff]   ;;  %v591_v6 = vld [vmem:[#allocation7 + $0x28] sm:$0xff]   ;;  %vm250_vm2 = vcmask 588800  }
  0x3d   :  { %555 = vmatprep.mubr.msk.bf16.mxu1 %vm723_vm0, %v722_v0  ;;  %541 = vmatprep.mubr.msk.bf16.mxu0 %vm723_vm0, %v722_v0  ;;  %v256_v4 = vsel %vm254_vm1, %v590_v3, 0  ;;  %v594_v7 = vld [vmem:[#allocation6 + $0x10] sm:$0xff]   ;;  %v593_v8 = vld [vmem:[#allocation7 + $0x20] sm:$0xff]   ;;  %v595_v10 = vld [vmem:[#allocation7 + $0x18] sm:$0xff]   ;;  %vm463_vm3 = vcmask 7168  }
  0x3e   :  { %526 = vmatpush3.bf16.msra.mxu0 %v588_v1  ;;  %546 = vmatpush3.bf16.msra.mxu1 %v256_v4  ;;  %v596_v9 = vld [vmem:[#allocation6 + $0x8] sm:$0xff]   ;;  %v597_v11 = vld [vmem:[#allocation7 + $0x10] sm:$0xff]   ;;  %v598_v12 = vld [vmem:[#allocation6] sm:$0xff]  }
  0x3f   :  { %527 = vmatprep.subr.bf16.mxu0 %v722_v0  ;;  %547 = vmatprep.subr.bf16.mxu1 %v722_v0  ;;  %v106_v13 = vld [vmem:[#allocation2] sm:$0xff]  ;;  %v601_v15 = vld [vmem:[#allocation9 + $0x38] sm:$0xff]   ;;  %v600_v18 = vld [vmem:[#allocation7] sm:$0xff]  }
  0x40   :  { %v107_v14 = vpack.c.bf16 %v106_v13, %v106_v13  ;;  %v599_v16 = vld [vmem:[#allocation7 + $0x8] sm:$0xff]   ;;  %v602_v17 = vld [vmem:[#allocation9 + $0x30] sm:$0xff]   ;;  %v604_v22 = vld [vmem:[#allocation9 + $0x20] sm:$0xff]  }
  0x41   :  { %v108_v19 = vld [vmem:[#allocation4] sm:$0xff]  ;;  %v603_v21 = vld [vmem:[#allocation9 + $0x28] sm:$0xff]   ;;  %v608_v26 = vld [vmem:[#allocation9] sm:$0xff]  }
  0x42   :  { %528 = vmatpush3.bf16.msra.mxu0 %v589_v2  ;;  %548 = vmatpush3.bf16.msra.mxu1 %v592_v5  ;;  %v109_v20 = vpack.c.bf16 %v108_v19, %v108_v19  ;;  %v605_v23 = vld [vmem:[#allocation9 + $0x18] sm:$0xff]   ;;  %v606_v24 = vld [vmem:[#allocation9 + $0x10] sm:$0xff]   ;;  %v607_v25 = vld [vmem:[#allocation9 + $0x8] sm:$0xff]  }
  0x43   :  { %529 = vmatprep.subr.bf16.mxu0 %v722_v0  ;;  %549 = vmatprep.subr.bf16.mxu1 %v722_v0  ;;  %v486_v32 = vld [vmem:[%s868_s4] ss:$0 sm:$0xff] }
  0x44   :  { %v487_v34 = vld [vmem:[%s869_s5] ss:$0 sm:$0xff] }
  0x45   :  { %v488_v42 = vld [vmem:[%s871_s7] ss:$0 sm:$0xff] }
  0x46   :  { %530 = vmatpush3.bf16.msra.mxu0 %v591_v6  ;;  %550 = vmatpush3.bf16.msra.mxu1 %v594_v7  ;;  %v497_v45 = vld [vmem:[%s872_s8] ss:$0 sm:$0xff] }
  0x47   :  { %531 = vmatprep.subr.bf16.mxu0 %v722_v0  ;;  %551 = vmatprep.subr.bf16.mxu1 %v722_v0  ;;  %v498_v49 = vld [vmem:[%s873_s9] ss:$0 sm:$0xff] }
  0x48   :  { %v499_v52 = vld [vmem:[%s874_s10] ss:$0 sm:$0xff] }
  0x49   :  { %v500_v53 = vld [vmem:[%s875_s11] ss:$0 sm:$0xff] }
  0x4a   :  { %532 = vmatpush3.bf16.msra.mxu0 %v593_v8  ;;  %552 = vmatpush3.bf16.msra.mxu1 %v596_v9 }
  0x4b   :  { %533 = vmatprep.subr.bf16.mxu0 %v722_v0  ;;  %553 = vmatprep.subr.bf16.mxu1 %v722_v0 }
  0x4e   :  { %534 = vmatpush3.bf16.msra.mxu0 %v595_v10  ;;  %554 = vmatpush3.bf16.msra.mxu1 %v598_v12 }
  0x4f   :  { %535 = vmatprep.subr.bf16.mxu0 %v722_v0  ;;  %559 = vmatprep.subr.bf16.mxu1 %v722_v0 }
  0x51   :  { %556 = vmatmul.mubr.msk.bf16.vlgmr.msra.gmra.mxu1 %vm250_vm2, %v107_v14 }
  0x52   :  { %536 = vmatpush3.bf16.msra.mxu0 %v597_v11  ;;  %560 = vmatpush3.bf16.msra.mxu1 %v601_v15 }
  0x53   :  { %537 = vmatprep.subr.bf16.mxu0 %v722_v0  ;;  %575 = vmatprep.mubr.msk.bf16.mxu1 %vm723_vm0, %v722_v0 }
  0x54   :  { %561 = vmatprep.subr.bf16.mxu1 %v722_v0 }
  0x56   :  { %538 = vmatpush3.bf16.msra.mxu0 %v599_v16  ;;  %562 = vmatpush3.bf16.msra.mxu1 %v602_v17 }
  0x57   :  { %539 = vmatprep.subr.bf16.mxu0 %v722_v0  ;;  %563 = vmatprep.subr.bf16.mxu1 %v722_v0 }
  0x5a   :  { %540 = vmatpush3.bf16.msra.mxu0 %v600_v18  ;;  %564 = vmatpush3.bf16.msra.mxu1 %v603_v21 }
  0x5b   :  { %565 = vmatprep.subr.bf16.mxu1 %v722_v0 }
  0x5d   :  { %542 = vmatmul.mubr.bf16.vlgmr.msra.gmra.mxu0 %v109_v20 }
  0x5e   :  { %566 = vmatpush3.bf16.msra.mxu1 %v604_v22 }
  0x5f   :  { %567 = vmatprep.subr.bf16.mxu1 %v722_v0 }
  0x62   :  { %568 = vmatpush3.bf16.msra.mxu1 %v605_v23 }
  0x63   :  { %569 = vmatprep.subr.bf16.mxu1 %v722_v0 }
  0x66   :  { %570 = vmatpush3.bf16.msra.mxu1 %v606_v24 }
  0x67   :  { %571 = vmatprep.subr.bf16.mxu1 %v722_v0 }
  0x6a   :  { %572 = vmatpush3.bf16.msra.mxu1 %v607_v25 }
  0x6b   :  { %573 = vmatprep.subr.bf16.mxu1 %v722_v0 }
  0x6e   :  { %574 = vmatpush3.bf16.msra.mxu1 %v608_v26 }
 0x111   :  { %v292_v27 = vpop.f32.mrf.mxu1 }
 0x113   :  { %v557_v28 = vpop.f32.mrf.mxu1 }
 0x115   :  { %v295_v29 = vpop.f32.mrf.mxu1 }
 0x117   :  { %v558_v30 = vpop.f32.mrf.mxu1 }
 0x11d   :  { %v217_v31 = vpop.f32.mrf.mxu0 }
 0x11e   :  { %v293_v33 = vadd.f32 %v292_v27, %v217_v31 }
 0x11f   :  { %v543_v35 = vpop.f32.mrf.mxu0 }
 0x120   :  { %v305_v36 = vmul.f32 %v486_v32, %v293_v33 }
 0x121   :  { %v220_v37 = vpop.f32.mrf.mxu0 }
 0x122   :  { %v313_v38 = vadd.f32 %v487_v34, %v305_v36 }
 0x123   :  { %v544_v39 = vpop.f32.mrf.mxu0 }
 0x124   :  { %v314_v40 = vmax.f32 %v313_v38, 0.0 }
 0x126   :  { %v315_v41 = vpack.c.bf16 %v314_v40, %v314_v40  ;;  %v459_v56 = vmul.f32 %v500_v53, %v314_v40 }
 0x128   :  { %576 = vmatmul.mubr.bf16.vlgmr.msra.gmra.mxu1 %v315_v41 }
 0x1e8   :  { %v421_v43 = vpop.f32.mrf.mxu1 }
 0x1e9   :  { %v422_v44 = vadd.f32 %v488_v42, %v421_v43 }
 0x1ea   :  { %v577_v46 = vpop.f32.mrf.mxu1 }
 0x1eb   :  { %v427_v47 = vmax.f32 %v422_v44, 0.0 }
 0x1ec   :  { %v424_v48 = vpop.f32.mrf.mxu1 }
 0x1ed   :  { %v435_v50 = vmul.f32 %v497_v45, %v427_v47 }
 0x1ee   :  { %v578_v51 = vpop.f32.mrf.mxu1 }
 0x1ef   :  { %v443_v54 = vadd.f32 %v498_v49, %v435_v50 }
 0x1f1   :  { %v451_v55 = vmul.f32 %v499_v52, %v443_v54 }
 0x1f3   :  { %v460_v57 = vadd.f32 %v459_v56, %v451_v55 }
 0x1f5   :  { %461 = vadd.xlane.f32.xlu0 %v460_v57 }
 0x27e   :  { %v462_v58 = vpop.xlane.xlu0 %461 }
 0x27f   :  { %464 = vst.msk [vmem:[%s876_s12] sm:$0xff] %vm463_vm3, %v462_v58 }
 0x280   :  { %469 = vsyncpa [#allocation3], 1 }
 0x281   :  { %470 = vsyncpa [#allocation5], 1 }
 0x282   :  { %471 = vsyncpa [#allocation8], 1 }

</bundles_post_ra>
